<compile_context>
chip_gen: v7x
topology: tpu7x:2x2x1
jax: 0.10.0
libtpu: 0.0.40
codegen_flags: <defaults>
</compile_context>

<pallas_src>
import functools

import jax
import jax.numpy as jnp
from jax.experimental import pallas as pl
from jax.experimental.pallas import tpu as pltpu

_LANES = 128
_SUBLANES = 8
_MAX_BLOCK_ROWS = 2048       # 2048 x 128 f32 = 1 MiB per pipeline buffer
_MIN_ROWS_PER_CORE = 512     # don't split tiny inputs across the 2 TCs


def _cdiv(a, b):
    return -(-a // b)


def _round_up(a, b):
    return _cdiv(a, b) * b


def _loss_combinier_kernel(t_ref, p_ref, out_ref, acc_ref, *, w_mse, w_l1, inv_n):
    i = pl.program_id(1)  # reduction axis (rows streamed per core)

    @pl.when(i == 0)
    def _init():
        acc_ref[...] = jnp.zeros_like(acc_ref)

    diff = t_ref[...].astype(jnp.float32) - p_ref[...].astype(jnp.float32)
    # Weights folded into a single per-element expression: one VPU accumulate,
    # no per-step reduction, one accumulator.
    acc_ref[...] += w_mse * (diff * diff) + w_l1 * jnp.abs(diff)

    @pl.when(i == pl.num_programs(1) - 1)
    def _finalize():
        # Single cross-lane/sublane reduction per core, at the very end.
        out_ref[0, 0] = jnp.sum(acc_ref[...]) * inv_n


def loss_combinier(target, predicted, weights=(0.7, 0.3)):
    """Weighted combination of MSE (mean) and L1 (mean) losses in one HBM pass."""
    assert target.shape == predicted.shape
    n = int(target.size)

    rows = _cdiv(n, _LANES)
    ncores = 2 if rows >= 2 * _MIN_ROWS_PER_CORE else 1
    rows_per_core = _cdiv(rows, ncores)
    blocks_per_core = _cdiv(rows_per_core, _MAX_BLOCK_ROWS)
    block_rows = _round_up(_cdiv(rows_per_core, blocks_per_core), _SUBLANES)
    padded_rows = ncores * blocks_per_core * block_rows
    padded_n = padded_rows * _LANES

    flat_t = target.reshape(-1)
    flat_p = predicted.reshape(-1)
    if padded_n != n:
        # Pad both with zeros: diff == 0 there, so zero contribution to either loss.
        flat_t = jnp.pad(flat_t, (0, padded_n - n))
        flat_p = jnp.pad(flat_p, (0, padded_n - n))
    t2 = flat_t.reshape(padded_rows, _LANES)
    p2 = flat_p.reshape(padded_rows, _LANES)

    kernel = functools.partial(
        _loss_combinier_kernel,
        w_mse=float(weights[0]),
        w_l1=float(weights[1]),
        inv_n=1.0 / float(n),
    )

    in_map = lambda c, i: (c * blocks_per_core + i, 0)

    partials = pl.pallas_call(
        kernel,
        out_shape=jax.ShapeDtypeStruct((ncores, 1), jnp.float32),
        grid_spec=pltpu.PrefetchScalarGridSpec(
            num_scalar_prefetch=0,
            grid=(ncores, blocks_per_core),
            in_specs=[
                pl.BlockSpec((block_rows, _LANES), in_map),
                pl.BlockSpec((block_rows, _LANES), in_map),
            ],
            out_specs=pl.BlockSpec(
                (1, 1), lambda c, i: (c, 0), memory_space=pltpu.SMEM
            ),
            scratch_shapes=[pltpu.VMEM((block_rows, _LANES), jnp.float32)],
        ),
        compiler_params=pltpu.CompilerParams(
            # Leading axis: per-TensorCore split (useful on v7x, harmless on 1-TC chips).
            # Trailing axis: the streaming reduction.
            dimension_semantics=("parallel", "arbitrary"),
        ),
    )(t2, p2)
    # Each core's partial is already weighted and divided by n; sum the partials.
    return jnp.sum(partials)


def _reference(target, predicted, weights=(0.7, 0.3)):
    diff = target.astype(jnp.float32) - predicted.astype(jnp.float32)
    mse = jnp.mean(diff * diff)
    l1 = jnp.mean(jnp.abs(diff))
    return weights[0] * mse + weights[1] * l1


if __name__ == "__main__":
    key = jax.random.PRNGKey(0)
    k1, k2, k3, k4 = jax.random.split(key, 4)

    # NCHW inputs, small shapes: batch=2, channels=4, spatial=16x16.
    target = jax.random.normal(k1, (2, 4, 16, 16), dtype=jnp.float32)
    predicted = jax.random.normal(k2, (2, 4, 16, 16), dtype=jnp.float32)

    out = loss_combinier(target, predicted)
    jax.block_until_ready(out)
    ref = _reference(target, predicted)
    assert jnp.allclose(out, ref, atol=1e-5, rtol=1e-5), (out, ref)

    # Extra check: non-tile-aligned shape exercises the zero-padding path.
    t_odd = jax.random.normal(k3, (2, 3, 17, 19), dtype=jnp.float32)
    p_odd = jax.random.normal(k4, (2, 3, 17, 19), dtype=jnp.float32)
    out_odd = loss_combinier(t_odd, p_odd)
    jax.block_until_ready(out_odd)
    ref_odd = _reference(t_odd, p_odd)
    assert jnp.allclose(out_odd, ref_odd, atol=1e-5, rtol=1e-5), (out_odd, ref_odd)

    print("KERNEL_OK")
</pallas_src>

<mosaic_0001>
module attributes {stable_mosaic.version = 11 : i64} {
  func.func @_loss_combinier_kernel(%arg0: i32, %arg1: i32, %arg2: memref<16x128xf32, #tpu.memory_space<vmem>>, %arg3: memref<16x128xf32, #tpu.memory_space<vmem>>, %arg4: memref<1x1xf32, #tpu.memory_space<smem>>, %arg5: memref<16x128xf32, #tpu.memory_space<vmem>>) attributes {dimension_semantics = [#tpu.dimension_semantics<parallel>, #tpu.dimension_semantics<arbitrary>], iteration_bounds = array<i64: 1, 1>, scalar_prefetch = 0 : i64, scratch_operands = 1 : i64, tpu.core_type = #tpu.core_type<tc>, window_params = [{transform_indices = @transform_0, window_bounds = array<i64: 16, 128>}, {transform_indices = @transform_1, window_bounds = array<i64: 16, 128>}, {transform_indices = @transform_2, window_bounds = array<i64: 1, 1>}]} {
    %c0_i32 = arith.constant 0 : i32
    %0 = arith.cmpi eq, %arg1, %c0_i32 : i32
    %1 = arith.extui %0 : i1 to i32
    %c0_i32_0 = arith.constant 0 : i32
    %2 = arith.cmpi ne, %1, %c0_i32_0 : i32
    scf.if %2 {
      %cst_11 = arith.constant 0.000000e+00 : f32
      %19 = vector.broadcast %cst_11 : f32 to vector<16x128xf32>
      %c0_12 = arith.constant 0 : index
      %c0_13 = arith.constant 0 : index
      %20 = vector.load %arg5[%c0_12, %c0_13] : memref<16x128xf32, #tpu.memory_space<vmem>>, vector<16x128xf32>
      tpu.vector_store %arg5[%c0_12, %c0_13], %19 {strides = array<i32>} : memref<16x128xf32, #tpu.memory_space<vmem>>, vector<16x128xf32>,
    } else {
    }
    %c0 = arith.constant 0 : index
    %c0_1 = arith.constant 0 : index
    %3 = vector.load %arg2[%c0, %c0_1] : memref<16x128xf32, #tpu.memory_space<vmem>>, vector<16x128xf32>
    %c0_2 = arith.constant 0 : index
    %c0_3 = arith.constant 0 : index
    %4 = vector.load %arg3[%c0_2, %c0_3] : memref<16x128xf32, #tpu.memory_space<vmem>>, vector<16x128xf32>
    %5 = arith.subf %3, %4 : vector<16x128xf32>
    %c0_4 = arith.constant 0 : index
    %c0_5 = arith.constant 0 : index
    %6 = vector.load %arg5[%c0_4, %c0_5] : memref<16x128xf32, #tpu.memory_space<vmem>>, vector<16x128xf32>
    %7 = arith.mulf %5, %5 : vector<16x128xf32>
    %cst = arith.constant 0.699999988 : f32
    %8 = vector.broadcast %cst : f32 to vector<16x128xf32>
    %9 = arith.mulf %8, %7 : vector<16x128xf32>
    %10 = math.absf %5 : vector<16x128xf32>
    %cst_6 = arith.constant 3.000000e-01 : f32
    %11 = vector.broadcast %cst_6 : f32 to vector<16x128xf32>
    %12 = arith.mulf %11, %10 : vector<16x128xf32>
    %13 = arith.addf %9, %12 : vector<16x128xf32>
    %14 = arith.addf %6, %13 : vector<16x128xf32>
    %c0_7 = arith.constant 0 : index
    %c0_8 = arith.constant 0 : index
    %15 = vector.load %arg5[%c0_7, %c0_8] : memref<16x128xf32, #tpu.memory_space<vmem>>, vector<16x128xf32>
    tpu.vector_store %arg5[%c0_7, %c0_8], %14 {strides = array<i32>} : memref<16x128xf32, #tpu.memory_space<vmem>>, vector<16x128xf32>,
    %c0_i32_9 = arith.constant 0 : i32
    %16 = arith.cmpi eq, %arg1, %c0_i32_9 : i32
    %17 = arith.extui %16 : i1 to i32
    %c0_i32_10 = arith.constant 0 : i32
    %18 = arith.cmpi ne, %17, %c0_i32_10 : i32
    scf.if %18 {
      %c0_11 = arith.constant 0 : index
      %c0_12 = arith.constant 0 : index
      %19 = vector.load %arg5[%c0_11, %c0_12] : memref<16x128xf32, #tpu.memory_space<vmem>>, vector<16x128xf32>
      %20 = vector.shape_cast %19 : vector<16x128xf32> to vector<1x16x128xf32>
      %cst_13 = arith.constant dense<0.000000e+00> : vector<1xf32>
      %21 = vector.multi_reduction <add>, %20, %cst_13 [1, 2] : vector<1x16x128xf32> to vector<1xf32>
      %22 = vector.shape_cast %21 : vector<1xf32> to vector<1x1x1xf32>
      %23 = vector.extract %22[0, 0, 0] : f32 from vector<1x1x1xf32>
      %cst_14 = arith.constant 4.8828125E-4 : f32
      %24 = arith.mulf %23, %cst_14 : f32
      %c0_15 = arith.constant 0 : index
      %c0_16 = arith.constant 0 : index
      %25 = memref.load %arg4[%c0_15, %c0_16] : memref<1x1xf32, #tpu.memory_space<smem>>
      memref.store %24, %arg4[%c0_15, %c0_16] : memref<1x1xf32, #tpu.memory_space<smem>>
    } else {
    }
    return
  }
  func.func @transform_0(%arg0: i32, %arg1: i32) -> (i32, i32) {
    %c1_i32 = arith.constant 1 : i32
    %0 = arith.muli %arg0, %c1_i32 : i32
    %1 = arith.addi %0, %arg1 : i32
    %c0_i32 = arith.constant 0 : i32
    %c0_i32_0 = arith.constant 0 : i32
    return %1, %c0_i32 : i32, i32
  }
  func.func @transform_1(%arg0: i32, %arg1: i32) -> (i32, i32) {
    %c1_i32 = arith.constant 1 : i32
    %0 = arith.muli %arg0, %c1_i32 : i32
    %1 = arith.addi %0, %arg1 : i32
    %c0_i32 = arith.constant 0 : i32
    %c0_i32_0 = arith.constant 0 : i32
    return %1, %c0_i32 : i32, i32
  }
  func.func @transform_2(%arg0: i32, %arg1: i32) -> (i32, i32) {
    %c0_i32 = arith.constant 0 : i32
    %c0_i32_0 = arith.constant 0 : i32
    return %arg0, %c0_i32 : i32, i32
  }
}

</mosaic_0001>

<bundles_post_ra>
// kernel: tpu_custom_call.1
= control target key start
LH: loop header
LB: loop body
LE: loop exit
PB: predicated region body
PF: predicated region fallthrough
CT: control target
= control target key end

     0   :  { %7 = vsyncpa [#allocation4], 0  ;;  %s236_s0 = inlined_call_operand.hbm [shape: f32[16,128], index: 0, kind: input, shape index: {}]   ;;  %s237_s1 = inlined_call_operand.hbm [shape: f32[16,128], index: 1, kind: input, shape index: {}]   ;;  %s238_s2 = inlined_call_operand.hbm [shape: f32[1,1], index: 2, kind: output, shape index: {}]  }
   0x1   :  { %8 = vsyncpa [#allocation7], 0 }
   0x2   :  { %9 = vsyncpa [#allocation5], 0  ;;  %s180_s9 = smov [#allocation3]   ;;  %s120_s13 = scalar_lea.hbm %s236_s0, 256 }
   0x3   :  { %s19_s10 = sshll.u32 %s180_s9, 4  ;;  %p121_p0 = scmp.ne.s32.totalorder %s236_s0, %s120_s13  ;;  %s20_s10 = int_to_ptr.vmem [resolvable:$true] %s19_s10 }
   0x4   :  { %p124_p1 = scmp.lt.u32.totalorder %s120_s13, %s236_s0 }
   0x6   :  { %p126_p2 = pnand %p124_p1, %p121_p0 }
   0x8   :  { %129 = shalt.err (!%p126_p2)
}
   0x9   :  { %s130_s18 = scalar_lea.vmem %s20_s10, 256  ;;  %p135_p4 = scmp.lt.s32.totalorder %s20_s10, %s20_s10 }
   0xa   :  { %p131_p3 = scmp.ne.s32.totalorder %s20_s10, %s130_s18  ;;  %p136_p5 = scmp.lt.s32.totalorder %s130_s18, %s130_s18 }
   0xc   :  { %p137_p6 = por %p136_p5, %p135_p4 }
   0xe   :  { %p138_p7 = pnand %p137_p6, %p131_p3 }
  0x10   :  { %141 = shalt.err (!%p138_p7)
}
  0x11   :  { %s181_s19 = smov 128   ;;  %s182_s20 = smov 8  }
  0x12   :  { %25 = dma.hbm_to_vmem [thread:$0]  %s236_s0, 256, %s20_s10, [#allocation4], %s181_s19, %s181_s19, %s182_s20  }
  0x13   :  { %s183_s23 = smov [#allocation6]   ;;  %s142_s27 = scalar_lea.hbm %s237_s1, 256 }
  0x14   :  { %s35_s24 = sshll.u32 %s183_s23, 4  ;;  %p143_p8 = scmp.ne.s32.totalorder %s237_s1, %s142_s27  ;;  %s36_s24 = int_to_ptr.vmem [resolvable:$true] %s35_s24 }
  0x15   :  { %p146_p9 = scmp.lt.u32.totalorder %s142_s27, %s237_s1 }
  0x17   :  { %p148_p10 = pnand %p146_p9, %p143_p8 }
  0x19   :  { %151 = shalt.err (!%p148_p10)
}
  0x1a   :  { %s152_s4 = scalar_lea.vmem %s36_s24, 256  ;;  %p157_p12 = scmp.lt.s32.totalorder %s36_s24, %s36_s24 }
  0x1b   :  { %p153_p11 = scmp.ne.s32.totalorder %s36_s24, %s152_s4  ;;  %p158_p13 = scmp.lt.s32.totalorder %s152_s4, %s152_s4 }
  0x1d   :  { %p159_p0 = por %p158_p13, %p157_p12 }
  0x1f   :  { %p160_p1 = pnand %p159_p0, %p153_p11 }
  0x21   :  { %163 = shalt.err (!%p160_p1)
}
  0x22   :  { %41 = dma.hbm_to_vmem [thread:$0]  %s237_s1, 256, %s36_s24, [#allocation7], %s181_s19, %s181_s19, %s182_s20  }
  0x23   :  { %174 = dma.done.wait [#allocation4], 256  }
  0x24   :  { %175 = vsyncadd [#allocation4], 4294967040 }
  0x25   :  { %176 = dma.done.wait [#allocation7], 256  }
  0x26   :  { %177 = vsyncadd [#allocation7], 4294967040  ;;  %v58_v0 = vld [vmem:[#allocation3] sm:$0xff]  ;;  %v59_v1 = vld [vmem:[#allocation3 + $0x8] sm:$0xff]  ;;  %s164_s9 = scalar_lea.hbm %s238_s2, 16 }
  0x27   :  { %v60_v2 = vld [vmem:[#allocation6] sm:$0xff]  ;;  %v61_v3 = vld [vmem:[#allocation6 + $0x8] sm:$0xff]  ;;  %p165_p2 = scmp.ne.s32.totalorder %s238_s2, %s164_s9  ;;  %p168_p3 = scmp.lt.u32.totalorder %s164_s9, %s238_s2 }
  0x28   :  { %v62_v4 = vsub.f32 %v58_v0, %v60_v2  ;;  %v63_v5 = vsub.f32 %v59_v1, %v61_v3 }
  0x29   :  { %p170_p4 = pnand %p168_p3, %p165_p2 }
  0x2a   :  { %v66_v6 = vmul.f32 %v62_v4, %v62_v4  ;;  %v70_v7 = vand.u32 2147483647, %v62_v4  ;;  %v67_v8 = vmul.f32 %v63_v5, %v63_v5  ;;  %v71_v9 = vand.u32 2147483647, %v63_v5 }
  0x2c   :  { %v68_v10 = vmul.f32 0.7, %v66_v6  ;;  %v72_v11 = vmul.f32 0.3, %v70_v7  ;;  %v69_v12 = vmul.f32 0.7, %v67_v8 }
  0x2d   :  { %v73_v13 = vmul.f32 0.3, %v71_v9 }
  0x2e   :  { %v74_v14 = vadd.f32 %v72_v11, %v68_v10 }
  0x2f   :  { %v75_v15 = vadd.f32 %v73_v13, %v69_v12 }
  0x31   :  { %v85_v16 = vadd.f32 %v75_v15, %v74_v14 }
  0x33   :  { %86 = vadd.xlane.f32.xlu0 %v85_v16 }
  0xc0   :  { %v87_v17 = vpop.xlane.xlu0 %86 }
  0xc1   :  { %v88_v18 = vrot.slane %v87_v17, 4 }
  0xc3   :  { %v89_v19 = vadd.f32 %v88_v18, %v87_v17 }
  0xc5   :  { %v90_v20 = vrot.slane %v89_v19, 2 }
  0xc7   :  { %v91_v21 = vadd.f32 %v90_v20, %v89_v19 }
  0xc9   :  { %v92_v22 = vrot.slane %v91_v21, 1 }
  0xcb   :  { %v93_v23 = vadd.f32 %v92_v22, %v91_v21 }
  0xcd   :  { %113 = vpush %v93_v23 }
  0xfe   :  { %s114_s1 = spop %113 }
  0xff   :  { %s95_s6 = smul.f32 0.00048828125, %s114_s1 }
 0x101   :  { %97 = sst [smem:[#allocation8]] %s95_s6 }
 0x102   :  { %173 = shalt.err (!%p170_p4)
}
 0x103   :  { %s184_s14 = smov [#allocation8]  }
 0x104   :  { %105 = dma.smem_to_hbm %s184_s14, 16, %s238_s2, [#allocation5]  }
 0x105   :  { %178 = dma.done.wait [#allocation5], 16  }
 0x106   :  { %179 = vsyncadd [#allocation5], 4294967280 }
 0x107   :  { %109 = sfence }
 0x108   :  { %110 = vsyncpa [#allocation4], 1 }
 0x109   :  { %111 = vsyncpa [#allocation7], 1 }
 0x10a   :  { %112 = vsyncpa [#allocation5], 1 }

</bundles_post_ra>
